<compile_context>
chip_gen: v7x
topology: tpu7x:2x2x1
jax: 0.10.0
libtpu: 0.0.40
codegen_flags: <defaults>
</compile_context>

<pallas_src>
import jax
import jax.numpy as jnp
from jax import lax
from jax.experimental import pallas as pl
from jax.experimental.pallas import tpu as pltpu

POLY_ORDER = 3
NUM_OUTPUTS = 2
INPUT_LEN = sum(POLY_ORDER + 1 - p for p in range(POLY_ORDER + 1))  # = 10 for P=3
NW = INPUT_LEN - 1            # non-constant features (constant folded into bias)

_LANE = 128                   # lane width
_SUBLANE = 8                  # f32 sublanes per vreg
_MAX_TR = 1024                # max sublane-rows per grid step (= 128K batch elems, ~4 MiB dbl-buffered)
_CHUNK = 32                   # sublane rows per inner vreg chunk (4 vregs per live slab)


def _round_up(n, m):
    return ((n + m - 1) // m) * m


def _poly_linear_kernel(x_ref, w_ref, b_ref, o_ref):
    # x_ref : (2, TR, 128)            VMEM  (plane 0 = x0, plane 1 = x1)
    # w_ref : (NUM_OUTPUTS * NW,)     SMEM  (nn.Linear weight, col 0 dropped, row-major)
    # b_ref : (NUM_OUTPUTS,)          SMEM  (bias + weight[:, 0])
    # o_ref : (NUM_OUTPUTS, TR, 128)  VMEM
    tr = x_ref.shape[1]
    chunk = _CHUNK if tr % _CHUNK == 0 else (16 if tr % 16 == 0 else _SUBLANE)
    n_chunks = tr // chunk

    # Hoist every SMEM scalar read out of the chunk loop.
    w = [[w_ref[j * NW + k] for k in range(NW)] for j in range(NUM_OUTPUTS)]
    b = [b_ref[j] for j in range(NUM_OUTPUTS)]

    def chunk_body(c, carry):
        r0 = pl.multiple_of(c * chunk, chunk)
        x0 = x_ref[0, pl.ds(r0, chunk), :]          # (chunk, 128) slab -> few vregs
        x1 = x_ref[1, pl.ds(r0, chunk), :]

        # Incremental integer powers x^1 .. x^POLY_ORDER (2*(P-1) muls).
        x0_pows = [x0]
        x1_pows = [x1]
        for _ in range(POLY_ORDER - 1):
            x0_pows.append(x0_pows[-1] * x0)
            x1_pows.append(x1_pows[-1] * x1)

        # Feature-outer / output-inner fused accumulation, PyTorch feature order.
        # Each mixed feature is consumed immediately; nothing stays live.
        acc = [None] * NUM_OUTPUTS
        k = 0
        for p in range(POLY_ORDER + 1):
            for q in range(POLY_ORDER + 1 - p):
                if p == 0 and q == 0:
                    continue                        # folded into bias on host
                if p == 0:
                    f = x1_pows[q - 1]
                elif q == 0:
                    f = x0_pows[p - 1]
                else:
                    f = x0_pows[p - 1] * x1_pows[q - 1]
                for j in range(NUM_OUTPUTS):
                    t = w[j][k] * f                 # scalar-broadcast VPU mul
                    acc[j] = t if acc[j] is None else acc[j] + t
                k += 1

        # Direct per-plane stores (no concatenate / relayout temporary).
        for j in range(NUM_OUTPUTS):
            o_ref[j, pl.ds(r0, chunk), :] = acc[j] + b[j]
        return carry

    lax.fori_loop(0, n_chunks, chunk_body, 0, unroll=(n_chunks <= 8))


@jax.jit
def _forward_batched(x, weight, bias):
    """x: (B, 2) f32; weight: (NUM_OUTPUTS, INPUT_LEN); bias: (NUM_OUTPUTS,)."""
    B = x.shape[0]

    # ---- static tile/grid selection (shape-derived) ----
    R = _round_up(pl.cdiv(max(B, 1), _LANE), _SUBLANE)   # sublane rows of real data
    n_steps = pl.cdiv(R, _MAX_TR)
    if R > _SUBLANE:
        n_steps = max(n_steps, 2)                        # >=2 steps -> v7x megacore split
    tr = pl.cdiv(R, n_steps)
    tr = _round_up(tr, _CHUNK if tr >= _CHUNK else _SUBLANE)
    R_pad = n_steps * tr                                 # small padding (<~3% + a few rows)
    b_pad = R_pad * _LANE

    # ---- host-side parameter prep ----
    b_eff = bias + weight[:, 0]            # constant feature (x0^0 * x1^0) -> bias
    w_flat = weight[:, 1:].reshape(-1)     # (NUM_OUTPUTS * NW,)

    # ---- lane+sublane-dense input layout: (2, R_pad, 128) ----
    # TODO(synk): if producer/consumer layouts were fixed, the transpose copies here
    # could be removed by de-interleaving even/odd lanes in-kernel with pltpu.roll.
    x_t = jnp.pad(x.T, ((0, 0), (0, b_pad - B))).reshape(2, R_pad, _LANE)

    out_t = pl.pallas_call(
        _poly_linear_kernel,
        out_shape=jax.ShapeDtypeStruct((NUM_OUTPUTS, R_pad, _LANE), jnp.float32),
        grid=(n_steps,),
        in_specs=[
            pl.BlockSpec((2, tr, _LANE), lambda i: (0, i, 0)),          # x tile (VMEM)
            pl.BlockSpec(memory_space=pltpu.MemorySpace.SMEM),          # weights (SMEM, resident)
            pl.BlockSpec(memory_space=pltpu.MemorySpace.SMEM),          # bias    (SMEM, resident)
        ],
        out_specs=pl.BlockSpec((NUM_OUTPUTS, tr, _LANE), lambda i: (0, i, 0)),
        compiler_params=pltpu.CompilerParams(
            dimension_semantics=("parallel",),   # batch loop shardable across TCs (v7x)
        ),
    )(x_t, w_flat, b_eff)

    return out_t.reshape(NUM_OUTPUTS, b_pad)[:, :B].T    # back to (B, NUM_OUTPUTS)


def polynomial_network_forward(x, weight, bias):
    x = jnp.asarray(x, jnp.float32)
    weight = jnp.asarray(weight, jnp.float32)
    bias = jnp.asarray(bias, jnp.float32)
    if x.ndim == 1:                        # unbatched path of the PyTorch module
        return _forward_batched(x[None, :], weight, bias)[0]
    return _forward_batched(x, weight, bias)


def reference_forward(x, weight, bias):
    feats = [x[:, 0] ** p * x[:, 1] ** q
             for p in range(POLY_ORDER + 1) for q in range(POLY_ORDER + 1 - p)]
    return jnp.stack(feats, axis=1) @ weight.T + bias


if __name__ == "__main__":
    key = jax.random.PRNGKey(0)
    k_x, k_x2, k_x3, k_w, k_b = jax.random.split(key, 5)

    # nn.Linear-style uniform(-1/sqrt(in), 1/sqrt(in)) init, deterministic.
    bound = 1.0 / jnp.sqrt(jnp.float32(INPUT_LEN))
    weight = jax.random.uniform(k_w, (NUM_OUTPUTS, INPUT_LEN), jnp.float32, -bound, bound)
    bias = jax.random.uniform(k_b, (NUM_OUTPUTS,), jnp.float32, -bound, bound)

    # Small batch (exercises lane/sublane padding 8 -> 1024).
    B = 8
    x = jax.random.normal(k_x, (B, 2), dtype=jnp.float32)
    out = jax.block_until_ready(polynomial_network_forward(x, weight, bias))
    ref = reference_forward(x, weight, bias)
    assert out.shape == (B, NUM_OUTPUTS)
    assert jnp.allclose(out, ref, atol=1e-5, rtol=1e-5), "mismatch vs reference (B=8)"

    # Non-multiple-of-128 batch (tail padding + slice-back).
    B2 = 300
    x2 = jax.random.normal(k_x2, (B2, 2), dtype=jnp.float32)
    out2 = jax.block_until_ready(polynomial_network_forward(x2, weight, bias))
    ref2 = reference_forward(x2, weight, bias)
    assert out2.shape == (B2, NUM_OUTPUTS)
    assert jnp.allclose(out2, ref2, atol=1e-5, rtol=1e-5), "mismatch vs reference (B=300)"

    # Larger batch: multi-step grid (megacore path) + multi-chunk inner loop.
    B3 = 5000
    x3 = jax.random.normal(k_x3, (B3, 2), dtype=jnp.float32)
    out3 = jax.block_until_ready(polynomial_network_forward(x3, weight, bias))
    ref3 = reference_forward(x3, weight, bias)
    assert out3.shape == (B3, NUM_OUTPUTS)
    assert jnp.allclose(out3, ref3, atol=1e-5, rtol=1e-5), "mismatch vs reference (B=5000)"

    # Unbatched (1-D) input path of the PyTorch module.
    x1d = x[0]
    out1d = jax.block_until_ready(polynomial_network_forward(x1d, weight, bias))
    assert out1d.shape == (NUM_OUTPUTS,)
    assert jnp.allclose(out1d, ref[0], atol=1e-5, rtol=1e-5), "mismatch vs reference (1-D)"

    print("KERNEL_OK")
</pallas_src>

<mosaic_0001>
module attributes {stable_mosaic.version = 11 : i64} {
  func.func @_poly_linear_kernel(%arg0: i32, %arg1: memref<2x8x128xf32, #tpu.memory_space<vmem>>, %arg2: memref<18xf32, #tpu.memory_space<smem>>, %arg3: memref<2xf32, #tpu.memory_space<smem>>, %arg4: memref<2x8x128xf32, #tpu.memory_space<vmem>>) attributes {dimension_semantics = [#tpu.dimension_semantics<parallel>], iteration_bounds = array<i64: 1>, scalar_prefetch = 0 : i64, scratch_operands = 0 : i64, tpu.core_type = #tpu.core_type<tc>, window_params = [{transform_indices = @transform_0, window_bounds = array<i64: 2, 8, 128>}, {transform_indices = @transform_1, window_bounds = array<i64: 18>}, {transform_indices = @transform_2, window_bounds = array<i64: 2>}, {transform_indices = @transform_3, window_bounds = array<i64: 2, 8, 128>}]} {
    %c0 = arith.constant 0 : index
    %0 = memref.load %arg2[%c0] : memref<18xf32, #tpu.memory_space<smem>>
    %c1 = arith.constant 1 : index
    %1 = memref.load %arg2[%c1] : memref<18xf32, #tpu.memory_space<smem>>
    %c2 = arith.constant 2 : index
    %2 = memref.load %arg2[%c2] : memref<18xf32, #tpu.memory_space<smem>>
    %c3 = arith.constant 3 : index
    %3 = memref.load %arg2[%c3] : memref<18xf32, #tpu.memory_space<smem>>
    %c4 = arith.constant 4 : index
    %4 = memref.load %arg2[%c4] : memref<18xf32, #tpu.memory_space<smem>>
    %c5 = arith.constant 5 : index
    %5 = memref.load %arg2[%c5] : memref<18xf32, #tpu.memory_space<smem>>
    %c6 = arith.constant 6 : index
    %6 = memref.load %arg2[%c6] : memref<18xf32, #tpu.memory_space<smem>>
    %c7 = arith.constant 7 : index
    %7 = memref.load %arg2[%c7] : memref<18xf32, #tpu.memory_space<smem>>
    %c8 = arith.constant 8 : index
    %8 = memref.load %arg2[%c8] : memref<18xf32, #tpu.memory_space<smem>>
    %c9 = arith.constant 9 : index
    %9 = memref.load %arg2[%c9] : memref<18xf32, #tpu.memory_space<smem>>
    %c10 = arith.constant 10 : index
    %10 = memref.load %arg2[%c10] : memref<18xf32, #tpu.memory_space<smem>>
    %c11 = arith.constant 11 : index
    %11 = memref.load %arg2[%c11] : memref<18xf32, #tpu.memory_space<smem>>
    %c12 = arith.constant 12 : index
    %12 = memref.load %arg2[%c12] : memref<18xf32, #tpu.memory_space<smem>>
    %c13 = arith.constant 13 : index
    %13 = memref.load %arg2[%c13] : memref<18xf32, #tpu.memory_space<smem>>
    %c14 = arith.constant 14 : index
    %14 = memref.load %arg2[%c14] : memref<18xf32, #tpu.memory_space<smem>>
    %c15 = arith.constant 15 : index
    %15 = memref.load %arg2[%c15] : memref<18xf32, #tpu.memory_space<smem>>
    %c16 = arith.constant 16 : index
    %16 = memref.load %arg2[%c16] : memref<18xf32, #tpu.memory_space<smem>>
    %c17 = arith.constant 17 : index
    %17 = memref.load %arg2[%c17] : memref<18xf32, #tpu.memory_space<smem>>
    %c0_0 = arith.constant 0 : index
    %18 = memref.load %arg3[%c0_0] : memref<2xf32, #tpu.memory_space<smem>>
    %c1_1 = arith.constant 1 : index
    %19 = memref.load %arg3[%c1_1] : memref<2xf32, #tpu.memory_space<smem>>
    %c0_i32 = arith.constant 0 : i32
    %c8_i32 = arith.constant 8 : i32
    %20 = arith.muli %c0_i32, %c8_i32 : i32
    %21 = tpu.assume_multiple %20, 8 : i32
    %c0_2 = arith.constant 0 : index
    %22 = arith.index_cast %21 : i32 to index
    %c0_3 = arith.constant 0 : index
    %23 = vector.load %arg1[%c0_2, %22, %c0_3] : memref<2x8x128xf32, #tpu.memory_space<vmem>>, vector<1x8x128xf32>
    %24 = vector.shape_cast %23 : vector<1x8x128xf32> to vector<8x128xf32>
    %c1_4 = arith.constant 1 : index
    %25 = arith.index_cast %21 : i32 to index
    %c0_5 = arith.constant 0 : index
    %26 = vector.load %arg1[%c1_4, %25, %c0_5] : memref<2x8x128xf32, #tpu.memory_space<vmem>>, vector<1x8x128xf32>
    %27 = vector.shape_cast %26 : vector<1x8x128xf32> to vector<8x128xf32>
    %28 = arith.mulf %24, %24 : vector<8x128xf32>
    %29 = arith.mulf %27, %27 : vector<8x128xf32>
    %30 = arith.mulf %28, %24 : vector<8x128xf32>
    %31 = arith.mulf %29, %27 : vector<8x128xf32>
    %32 = vector.broadcast %0 : f32 to vector<8x128xf32>
    %33 = arith.mulf %32, %27 : vector<8x128xf32>
    %34 = vector.broadcast %9 : f32 to vector<8x128xf32>
    %35 = arith.mulf %34, %27 : vector<8x128xf32>
    %36 = vector.broadcast %1 : f32 to vector<8x128xf32>
    %37 = arith.mulf %36, %29 : vector<8x128xf32>
    %38 = arith.addf %33, %37 : vector<8x128xf32>
    %39 = vector.broadcast %10 : f32 to vector<8x128xf32>
    %40 = arith.mulf %39, %29 : vector<8x128xf32>
    %41 = arith.addf %35, %40 : vector<8x128xf32>
    %42 = vector.broadcast %2 : f32 to vector<8x128xf32>
    %43 = arith.mulf %42, %31 : vector<8x128xf32>
    %44 = arith.addf %38, %43 : vector<8x128xf32>
    %45 = vector.broadcast %11 : f32 to vector<8x128xf32>
    %46 = arith.mulf %45, %31 : vector<8x128xf32>
    %47 = arith.addf %41, %46 : vector<8x128xf32>
    %48 = vector.broadcast %3 : f32 to vector<8x128xf32>
    %49 = arith.mulf %48, %24 : vector<8x128xf32>
    %50 = arith.addf %44, %49 : vector<8x128xf32>
    %51 = vector.broadcast %12 : f32 to vector<8x128xf32>
    %52 = arith.mulf %51, %24 : vector<8x128xf32>
    %53 = arith.addf %47, %52 : vector<8x128xf32>
    %54 = arith.mulf %24, %27 : vector<8x128xf32>
    %55 = vector.broadcast %4 : f32 to vector<8x128xf32>
    %56 = arith.mulf %55, %54 : vector<8x128xf32>
    %57 = arith.addf %50, %56 : vector<8x128xf32>
    %58 = vector.broadcast %13 : f32 to vector<8x128xf32>
    %59 = arith.mulf %58, %54 : vector<8x128xf32>
    %60 = arith.addf %53, %59 : vector<8x128xf32>
    %61 = arith.mulf %24, %29 : vector<8x128xf32>
    %62 = vector.broadcast %5 : f32 to vector<8x128xf32>
    %63 = arith.mulf %62, %61 : vector<8x128xf32>
    %64 = arith.addf %57, %63 : vector<8x128xf32>
    %65 = vector.broadcast %14 : f32 to vector<8x128xf32>
    %66 = arith.mulf %65, %61 : vector<8x128xf32>
    %67 = arith.addf %60, %66 : vector<8x128xf32>
    %68 = vector.broadcast %6 : f32 to vector<8x128xf32>
    %69 = arith.mulf %68, %28 : vector<8x128xf32>
    %70 = arith.addf %64, %69 : vector<8x128xf32>
    %71 = vector.broadcast %15 : f32 to vector<8x128xf32>
    %72 = arith.mulf %71, %28 : vector<8x128xf32>
    %73 = arith.addf %67, %72 : vector<8x128xf32>
    %74 = arith.mulf %28, %27 : vector<8x128xf32>
    %75 = vector.broadcast %7 : f32 to vector<8x128xf32>
    %76 = arith.mulf %75, %74 : vector<8x128xf32>
    %77 = arith.addf %70, %76 : vector<8x128xf32>
    %78 = vector.broadcast %16 : f32 to vector<8x128xf32>
    %79 = arith.mulf %78, %74 : vector<8x128xf32>
    %80 = arith.addf %73, %79 : vector<8x128xf32>
    %81 = vector.broadcast %8 : f32 to vector<8x128xf32>
    %82 = arith.mulf %81, %30 : vector<8x128xf32>
    %83 = arith.addf %77, %82 : vector<8x128xf32>
    %84 = vector.broadcast %17 : f32 to vector<8x128xf32>
    %85 = arith.mulf %84, %30 : vector<8x128xf32>
    %86 = arith.addf %80, %85 : vector<8x128xf32>
    %87 = vector.broadcast %18 : f32 to vector<8x128xf32>
    %88 = arith.addf %83, %87 : vector<8x128xf32>
    %c0_6 = arith.constant 0 : index
    %89 = arith.index_cast %21 : i32 to index
    %c0_7 = arith.constant 0 : index
    %90 = vector.load %arg4[%c0_6, %89, %c0_7] : memref<2x8x128xf32, #tpu.memory_space<vmem>>, vector<1x8x128xf32>
    %91 = vector.shape_cast %90 : vector<1x8x128xf32> to vector<8x128xf32>
    %92 = vector.shape_cast %88 : vector<8x128xf32> to vector<1x8x128xf32>
    tpu.vector_store %arg4[%c0_6, %89, %c0_7], %92 {strides = array<i32>} : memref<2x8x128xf32, #tpu.memory_space<vmem>>, vector<1x8x128xf32>,
    %93 = vector.broadcast %19 : f32 to vector<8x128xf32>
    %94 = arith.addf %86, %93 : vector<8x128xf32>
    %c1_8 = arith.constant 1 : index
    %95 = arith.index_cast %21 : i32 to index
    %c0_9 = arith.constant 0 : index
    %96 = vector.load %arg4[%c1_8, %95, %c0_9] : memref<2x8x128xf32, #tpu.memory_space<vmem>>, vector<1x8x128xf32>
    %97 = vector.shape_cast %96 : vector<1x8x128xf32> to vector<8x128xf32>
    %98 = vector.shape_cast %94 : vector<8x128xf32> to vector<1x8x128xf32>
    tpu.vector_store %arg4[%c1_8, %95, %c0_9], %98 {strides = array<i32>} : memref<2x8x128xf32, #tpu.memory_space<vmem>>, vector<1x8x128xf32>,
    %c1_i32 = arith.constant 1 : i32
    return
  }
  func.func @transform_0(%arg0: i32) -> (i32, i32, i32) {
    %c0_i32 = arith.constant 0 : i32
    %c0_i32_0 = arith.constant 0 : i32
    %c0_i32_1 = arith.constant 0 : i32
    return %c0_i32, %arg0, %c0_i32_0 : i32, i32, i32
  }
  func.func @transform_1(%arg0: i32) -> i32 {
    %c0_i32 = arith.constant 0 : i32
    %c0_i32_0 = arith.constant 0 : i32
    return %c0_i32 : i32
  }
  func.func @transform_2(%arg0: i32) -> i32 {
    %c0_i32 = arith.constant 0 : i32
    %c0_i32_0 = arith.constant 0 : i32
    return %c0_i32 : i32
  }
  func.func @transform_3(%arg0: i32) -> (i32, i32, i32) {
    %c0_i32 = arith.constant 0 : i32
    %c0_i32_0 = arith.constant 0 : i32
    %c0_i32_1 = arith.constant 0 : i32
    return %c0_i32, %arg0, %c0_i32_0 : i32, i32, i32
  }
}

</mosaic_0001>

<bundles_post_ra>
// kernel: _forward_batched.1
= control target key start
LH: loop header
LB: loop body
LE: loop exit
PB: predicated region body
PF: predicated region fallthrough
CT: control target
= control target key end

     0   :  { %8 = vsyncpa [#allocation3], 0  ;;  %s257_s0 = inlined_call_operand.vmem [shape: f32[2,8,128], index: 0, kind: input, shape index: {}]   ;;  %s258_s1 = inlined_call_operand.vmem [shape: f32[18], index: 1, kind: input, shape index: {}]   ;;  %s259_s2 = inlined_call_operand.vmem [shape: f32[2], index: 2, kind: input, shape index: {}]   ;;  %s260_s3 = inlined_call_operand.vmem [shape: f32[2,8,128], index: 3, kind: output, shape index: {}]  }
   0x1   :  { %s18_s14 = sshll.u32 %s258_s1, 4  ;;  %s19_s14 = int_to_ptr.vmem [resolvable:$true] %s18_s14 }
   0x2   :  { %9 = vsyncpa [#allocation5], 0  ;;  %s28_s17 = sshll.u32 %s259_s2, 4  ;;  %s159_s18 = scalar_lea.vmem %s19_s14, 16  ;;  %s29_s17 = int_to_ptr.vmem [resolvable:$true] %s28_s17 }
   0x3   :  { %p160_p0 = scmp.ne.s32.totalorder %s19_s14, %s159_s18  ;;  %p164_p1 = scmp.lt.s32.totalorder %s19_s14, %s19_s14 }
   0x4   :  { %p165_p2 = scmp.lt.s32.totalorder %s159_s18, %s159_s18 }
   0x6   :  { %p166_p3 = por %p165_p2, %p164_p1 }
   0x8   :  { %p167_p4 = pnand %p166_p3, %p160_p0 }
   0xa   :  { %170 = shalt.err (!%p167_p4)
}
   0xb   :  { %s187_s19 = smov [#allocation2]   ;;  %s171_s20 = scalar_lea.vmem %s29_s17, 16 }
   0xc   :  { %21 = dma.vmem_to_smem %s19_s14, 16, %s187_s19, [#allocation3]  }
   0xd   :  { %p172_p5 = scmp.ne.s32.totalorder %s29_s17, %s171_s20  ;;  %p176_p6 = scmp.lt.s32.totalorder %s29_s17, %s29_s17 }
   0xe   :  { %p177_p7 = scmp.lt.s32.totalorder %s171_s20, %s171_s20 }
  0x10   :  { %p178_p8 = por %p177_p7, %p176_p6 }
  0x12   :  { %p179_p9 = pnand %p178_p8, %p172_p5 }
  0x14   :  { %182 = shalt.err (!%p179_p9)
}
  0x15   :  { %s188_s1 = smov [#allocation4]  }
  0x16   :  { %31 = dma.vmem_to_smem %s29_s17, 16, %s188_s1, [#allocation5]  }
  0x17   :  { %183 = dma.done.wait [#allocation3], 16  }
  0x18   :  { %184 = vsyncadd [#allocation3], 4294967280 }
  0x19   :  { %185 = dma.done.wait [#allocation5], 16  }
  0x1a   :  { %186 = vsyncadd [#allocation5], 4294967280 }
  0x1b   :  { %38 = sfence }
  0x1c   :  { %s39_s2 = sld [smem:[#allocation2]]  ;;  %s137_s21 = sld [smem:[#allocation2 + $0x1]]  ;;  %v155_v0 = vld [vmem:[%s257_s0 + $0x8] sm:$0xff]  ;;  %v59_v2 = vld [vmem:[%s257_s0] sm:$0xff] }
  0x1d   :  { %s138_s24 = sld [smem:[#allocation2 + $0x2]]  ;;  %s139_s25 = sld [smem:[#allocation2 + $0x3]]  ;;  %v64_v1 = vmul.f32 %v155_v0, %v155_v0  ;;  %v63_v4 = vmul.f32 %v59_v2, %v59_v2  ;;  %v89_v7 = vmul.f32 %v155_v0, %v59_v2 }
  0x1e   :  { %s140_s26 = sld [smem:[#allocation2 + $0x4]]  ;;  %s218_s27 = sld [smem:[#allocation2 + $0x5]] }
  0x1f   :  { %s220_s28 = sld [smem:[#allocation2 + $0x6]]  ;;  %s225_s4 = sld [smem:[#allocation2 + $0x7]]  ;;  %v66_v3 = vmul.f32 %v155_v0, %v64_v1  ;;  %v96_v16 = vmul.f32 %v64_v1, %v59_v2  ;;  %v109_v18 = vmul.f32 %v155_v0, %v63_v4  ;;  %v65_v31 = vmul.f32 %v63_v4, %v59_v2 }
  0x20   :  { %s145_s5 = sld [smem:[#allocation2 + $0x9]]  ;;  %s227_s6 = sld [smem:[#allocation2 + $0xa]] }
  0x21   :  { %s147_s7 = sld [smem:[#allocation2 + $0xb]]  ;;  %s229_s8 = sld [smem:[#allocation2 + $0xc]] }
  0x22   :  { %v67_v5 = vstv %s39_s2  ;;  %v71_v6 = vstv %s137_s21  ;;  %s231_s0 = sld [smem:[#allocation2 + $0xd]]  ;;  %s233_s9 = sld [smem:[#allocation2 + $0x8]] }
  0x23   :  { %v68_v8 = vmul.f32 %v155_v0, %v67_v5  ;;  %v72_v9 = vmul.f32 %v71_v6, %v64_v1  ;;  %v77_v10 = vstv %s138_s24  ;;  %v83_v11 = vstv %s139_s25  ;;  %s235_s10 = sld [smem:[#allocation2 + $0xe]]  ;;  %s238_s11 = sld [smem:[#allocation2 + $0xf]] }
  0x24   :  { %v78_v12 = vmul.f32 %v77_v10, %v66_v3  ;;  %v90_v13 = vstv %s140_s26  ;;  %v84_v15 = vmul.f32 %v83_v11, %v59_v2  ;;  %v97_v17 = vstv %s218_s27  ;;  %s241_s12 = sld [smem:[#allocation2 + $0x10]]  ;;  %s153_s14 = sld [smem:[#allocation2 + $0x11]] }
  0x25   :  { %v73_v14 = vadd.f32 %v72_v9, %v68_v8  ;;  %v91_v20 = vmul.f32 %v90_v13, %v89_v7  ;;  %v103_v21 = vstv %s220_s28  ;;  %v98_v28 = vmul.f32 %v97_v17, %v96_v16  ;;  %s57_s13 = sld [smem:[#allocation4]]  ;;  %s154_s15 = sld [smem:[#allocation4 + $0x1]] }
  0x26   :  { %v69_v22 = vstv %s145_s5  ;;  %v74_v24 = vstv %s227_s6  ;;  %v110_v32 = vstv %s225_s4  ;;  %v104_v35 = vmul.f32 %v103_v21, %v63_v4 }
  0x27   :  { %v79_v19 = vadd.f32 %v78_v12, %v73_v14  ;;  %v70_v23 = vmul.f32 %v155_v0, %v69_v22  ;;  %v80_v25 = vstv %s147_s7  ;;  %v86_v26 = vstv %s229_s8 }
  0x28   :  { %v75_v29 = vmul.f32 %v74_v24, %v64_v1  ;;  %v81_v30 = vmul.f32 %v80_v25, %v66_v3  ;;  %v93_v33 = vstv %s231_s0  ;;  %v87_v37 = vmul.f32 %v86_v26, %v59_v2 }
  0x29   :  { %v85_v27 = vadd.f32 %v84_v15, %v79_v19  ;;  %v116_v38 = vstv %s233_s9  ;;  %v100_v39 = vstv %s235_s10  ;;  %v111_v41 = vmul.f32 %v110_v32, %v109_v18 }
  0x2a   :  { %v76_v36 = vadd.f32 %v75_v29, %v70_v23  ;;  %v94_v43 = vmul.f32 %v93_v33, %v89_v7  ;;  %v106_v44 = vstv %s238_s11  ;;  %v117_v46 = vmul.f32 %v116_v38, %v65_v31 }
  0x2b   :  { %v92_v34 = vadd.f32 %v91_v20, %v85_v27  ;;  %v101_v48 = vmul.f32 %v100_v39, %v96_v16  ;;  %v113_v49 = vstv %s241_s12  ;;  %v107_v52 = vmul.f32 %v106_v44, %v63_v4 }
  0x2c   :  { %v82_v42 = vadd.f32 %v81_v30, %v76_v36  ;;  %v122_v53 = vstv %s57_s13  ;;  %v119_v54 = vstv %s153_s14  ;;  %v114_v57 = vmul.f32 %v113_v49, %v109_v18 }
  0x2d   :  { %v99_v40 = vadd.f32 %v98_v28, %v92_v34  ;;  %v120_v60 = vmul.f32 %v119_v54, %v65_v31  ;;  %v125_v62 = vstv %s154_s15 }
  0x2e   :  { %v88_v47 = vadd.f32 %v87_v37, %v82_v42 }
  0x2f   :  { %v105_v45 = vadd.f32 %v104_v35, %v99_v40 }
  0x30   :  { %v95_v51 = vadd.f32 %v94_v43, %v88_v47 }
  0x31   :  { %v112_v50 = vadd.f32 %v111_v41, %v105_v45 }
  0x32   :  { %v102_v56 = vadd.f32 %v101_v48, %v95_v51 }
  0x33   :  { %v118_v55 = vadd.f32 %v117_v46, %v112_v50 }
  0x34   :  { %v108_v59 = vadd.f32 %v107_v52, %v102_v56 }
  0x35   :  { %v123_v58 = vadd.f32 %v122_v53, %v118_v55 }
  0x36   :  { %v115_v61 = vadd.f32 %v114_v57, %v108_v59 }
  0x37   :  { %124 = vst [vmem:[%s260_s3] sm:$0xff] %v123_v58 }
  0x38   :  { %v121_v63 = vadd.f32 %v120_v60, %v115_v61 }
  0x3a   :  { %v126_v0 = vadd.f32 %v125_v62, %v121_v63 }
  0x3c   :  { %156 = vst [vmem:[%s260_s3 + $0x8] sm:$0xff] %v126_v0 }
  0x3d   :  { %133 = vsyncpa [#allocation3], 1 }
  0x3e   :  { %134 = vsyncpa [#allocation5], 1 }

</bundles_post_ra>
